<compile_context>
chip_gen: v7x
topology: tpu7x:2x2x1
jax: 0.10.0
libtpu: 0.0.40
codegen_flags: <defaults>
</compile_context>

<pallas_src>
import jax
import jax.numpy as jnp
from jax.experimental import pallas as pl
from jax.experimental.pallas import tpu as pltpu


def combined_model3_kernel(seq_ref, we_ref, be_ref, wh_ref, bh_ref, y_ref, s_ref):
    # Encoder ("pretrained_model"): x = relu(seq @ W_enc + b_enc), f32 accumulate.
    x = jnp.dot(seq_ref[...], we_ref[...], preferred_element_type=jnp.float32)
    x = jnp.maximum(x + be_ref[...], 0.0)

    # Single fused head matmul: columns [0:N) are the 4 concatenated value
    # heads, columns [N:2N) are the 4 concatenated status heads.
    h = jnp.dot(x.astype(wh_ref.dtype), wh_ref[...],
                preferred_element_type=jnp.float32) + bh_ref[...]

    n = y_ref.shape[-1]
    y_ref[...] = h[:, :n].astype(y_ref.dtype)
    s_ref[...] = jax.nn.sigmoid(h[:, n:]).astype(s_ref.dtype)


def _row_tile(m, target=512):
    """Pick a row-tile size: big enough to pipeline well, dividing M when possible."""
    if m <= target:
        return m
    for tm in range(target, 7, -8):
        if m % tm == 0:
            return tm
    return target  # ragged last tile; Pallas masks out-of-bounds output rows


def combined_model3(sequence, w_enc, b_enc, w_y, b_y, w_s, b_s,
                    compute_dtype=jnp.bfloat16):
    """sequence: [B, T, IN_DIM] -> (combined [B,T,4*OUT], combined_status [B,T,4*OUT])."""
    B, T, in_dim = sequence.shape
    hidden = w_enc.shape[1]
    out_total = w_y.shape[1]          # 4 * OUT_DIM (== torch.cat(dim=2) width)
    M = B * T
    TM = _row_tile(M)

    # Streamed / MXU operands in compute_dtype; biases stay f32 (added post-accumulate).
    seq2d = sequence.reshape(M, in_dim).astype(compute_dtype)
    w_enc_c = w_enc.astype(compute_dtype)
    # Fuse the value and status heads into one weight: one MXU pass, x reused once.
    w_heads = jnp.concatenate([w_y, w_s], axis=1).astype(compute_dtype)
    b_enc2 = b_enc.reshape(1, hidden).astype(jnp.float32)
    b_heads = jnp.concatenate([b_y, b_s], axis=0).reshape(1, 2 * out_total).astype(jnp.float32)

    resident = lambda shape: pl.BlockSpec(shape, lambda i: (0, 0))

    y2d, s2d = pl.pallas_call(
        combined_model3_kernel,
        out_shape=(
            jax.ShapeDtypeStruct((M, out_total), jnp.float32),
            jax.ShapeDtypeStruct((M, out_total), jnp.float32),
        ),
        grid=(pl.cdiv(M, TM),),
        in_specs=[
            pl.BlockSpec((TM, in_dim), lambda i: (i, 0)),   # streamed row tiles
            resident((in_dim, hidden)),                     # weights stay in VMEM
            resident((1, hidden)),
            resident((hidden, 2 * out_total)),
            resident((1, 2 * out_total)),
        ],
        out_specs=(
            pl.BlockSpec((TM, out_total), lambda i: (i, 0)),
            pl.BlockSpec((TM, out_total), lambda i: (i, 0)),
        ),
        compiler_params=pltpu.CompilerParams(
            dimension_semantics=("parallel",),
        ),
    )(seq2d, w_enc_c, b_enc2, w_heads, b_heads)

    return y2d.reshape(B, T, out_total), s2d.reshape(B, T, out_total)


def _init_params(key, in_dim, hidden, out_dim, n_heads=4):
    ks = jax.random.split(key, 3 + 4 * n_heads)
    scale_e = 1.0 / jnp.sqrt(in_dim)
    scale_h = 1.0 / jnp.sqrt(hidden)
    w_enc = jax.random.uniform(ks[0], (in_dim, hidden), jnp.float32, -scale_e, scale_e)
    b_enc = jax.random.uniform(ks[1], (hidden,), jnp.float32, -scale_e, scale_e)

    wy_list, by_list, ws_list, bs_list = [], [], [], []
    for h in range(n_heads):
        k0, k1, k2, k3 = ks[3 + 4 * h: 3 + 4 * (h + 1)]
        wy_list.append(jax.random.uniform(k0, (hidden, out_dim), jnp.float32, -scale_h, scale_h))
        by_list.append(jax.random.uniform(k1, (out_dim,), jnp.float32, -scale_h, scale_h))
        ws_list.append(jax.random.uniform(k2, (hidden, out_dim), jnp.float32, -scale_h, scale_h))
        bs_list.append(jax.random.uniform(k3, (out_dim,), jnp.float32, -scale_h, scale_h))

    # Concatenate the 4 head weights along the output axis == torch.cat([...], dim=2).
    w_y = jnp.concatenate(wy_list, axis=1)
    b_y = jnp.concatenate(by_list, axis=0)
    w_s = jnp.concatenate(ws_list, axis=1)
    b_s = jnp.concatenate(bs_list, axis=0)
    return w_enc, b_enc, w_y, b_y, w_s, b_s


def _reference(sequence, w_enc, b_enc, w_y, b_y, w_s, b_s):
    x = jnp.maximum(jnp.einsum('btd,dh->bth', sequence, w_enc) + b_enc, 0.0)
    y = jnp.einsum('bth,ho->bto', x, w_y) + b_y
    s = jax.nn.sigmoid(jnp.einsum('bth,ho->bto', x, w_s) + b_s)
    return y, s


if __name__ == "__main__":
    B, T, IN_DIM, HIDDEN, OUT_DIM = 2, 8, 32, 64, 32

    key = jax.random.PRNGKey(0)
    k_seq, k_par = jax.random.split(key)
    sequence = jax.random.normal(k_seq, (B, T, IN_DIM), jnp.float32)
    params = _init_params(k_par, IN_DIM, HIDDEN, OUT_DIM)

    ref_y, ref_s = _reference(sequence, *params)

    # f32 path: exact match to the original module's semantics.
    y32, s32 = combined_model3(sequence, *params, compute_dtype=jnp.float32)
    y32 = jax.block_until_ready(y32)
    s32 = jax.block_until_ready(s32)
    assert y32.shape == (B, T, 4 * OUT_DIM)
    assert s32.shape == (B, T, 4 * OUT_DIM)
    assert jnp.allclose(y32, ref_y, atol=1e-5, rtol=1e-5)
    assert jnp.allclose(s32, ref_s, atol=1e-5, rtol=1e-5)

    # Default bf16 streaming path (f32 accumulation): looser tolerance vs f32 reference.
    combined, combined_status = combined_model3(sequence, *params)
    combined = jax.block_until_ready(combined)
    combined_status = jax.block_until_ready(combined_status)
    assert combined.shape == (B, T, 4 * OUT_DIM)
    assert combined_status.shape == (B, T, 4 * OUT_DIM)
    assert jnp.allclose(combined, ref_y, atol=5e-2, rtol=5e-2)
    assert jnp.allclose(combined_status, ref_s, atol=5e-2, rtol=5e-2)

    print("KERNEL_OK")
</pallas_src>

<mosaic_0001>
module attributes {stable_mosaic.version = 11 : i64} {
  func.func @combined_model3_kernel(%arg0: i32, %arg1: memref<16x32xf32, #tpu.memory_space<vmem>>, %arg2: memref<32x64xf32, #tpu.memory_space<vmem>>, %arg3: memref<1x64xf32, #tpu.memory_space<vmem>>, %arg4: memref<64x256xf32, #tpu.memory_space<vmem>>, %arg5: memref<1x256xf32, #tpu.memory_space<vmem>>, %arg6: memref<16x128xf32, #tpu.memory_space<vmem>>, %arg7: memref<16x128xf32, #tpu.memory_space<vmem>>) attributes {dimension_semantics = [#tpu.dimension_semantics<parallel>], iteration_bounds = array<i64: 1>, scalar_prefetch = 0 : i64, scratch_operands = 0 : i64, tpu.core_type = #tpu.core_type<tc>, window_params = [{transform_indices = @transform_0, window_bounds = array<i64: 16, 32>}, {pipeline_mode = #tpu.pipeline_mode<synchronous>, transform_indices = @transform_1, window_bounds = array<i64: 32, 64>}, {pipeline_mode = #tpu.pipeline_mode<synchronous>, transform_indices = @transform_2, window_bounds = array<i64: 1, 64>}, {pipeline_mode = #tpu.pipeline_mode<synchronous>, transform_indices = @transform_3, window_bounds = array<i64: 64, 256>}, {pipeline_mode = #tpu.pipeline_mode<synchronous>, transform_indices = @transform_4, window_bounds = array<i64: 1, 256>}, {transform_indices = @transform_5, window_bounds = array<i64: 16, 128>}, {transform_indices = @transform_6, window_bounds = array<i64: 16, 128>}]} {
    %c0 = arith.constant 0 : index
    %c0_0 = arith.constant 0 : index
    %0 = vector.load %arg1[%c0, %c0_0] : memref<16x32xf32, #tpu.memory_space<vmem>>, vector<16x32xf32>
    %c0_1 = arith.constant 0 : index
    %c0_2 = arith.constant 0 : index
    %1 = vector.load %arg2[%c0_1, %c0_2] : memref<32x64xf32, #tpu.memory_space<vmem>>, vector<32x64xf32>
    %cst = arith.constant dense<0.000000e+00> : vector<16x64xf32>
    %2 = tpu.matmul %0, %1, %cst {dimension_numbers = #tpu.dot_dimension_numbers<[1], [0], [0], [1], [0, 0, 1, 1], [], []>} : vector<16x32xf32>, vector<32x64xf32>, vector<16x64xf32> -> vector<16x64xf32>
    %c0_3 = arith.constant 0 : index
    %c0_4 = arith.constant 0 : index
    %3 = vector.load %arg3[%c0_3, %c0_4] : memref<1x64xf32, #tpu.memory_space<vmem>>, vector<1x64xf32>
    %4 = vector.broadcast %3 : vector<1x64xf32> to vector<16x64xf32>
    %5 = arith.addf %2, %4 : vector<16x64xf32>
    %cst_5 = arith.constant 0.000000e+00 : f32
    %6 = vector.broadcast %cst_5 : f32 to vector<16x64xf32>
    %7 = arith.maximumf %5, %6 : vector<16x64xf32>
    %c0_6 = arith.constant 0 : index
    %c0_7 = arith.constant 0 : index
    %8 = vector.load %arg4[%c0_6, %c0_7] : memref<64x256xf32, #tpu.memory_space<vmem>>, vector<64x256xf32>
    %cst_8 = arith.constant dense<0.000000e+00> : vector<16x256xf32>
    %9 = tpu.matmul %7, %8, %cst_8 {dimension_numbers = #tpu.dot_dimension_numbers<[1], [0], [0], [1], [0, 0, 1, 1], [], []>} : vector<16x64xf32>, vector<64x256xf32>, vector<16x256xf32> -> vector<16x256xf32>
    %c0_9 = arith.constant 0 : index
    %c0_10 = arith.constant 0 : index
    %10 = vector.load %arg5[%c0_9, %c0_10] : memref<1x256xf32, #tpu.memory_space<vmem>>, vector<1x256xf32>
    %11 = vector.broadcast %10 : vector<1x256xf32> to vector<16x256xf32>
    %12 = arith.addf %9, %11 : vector<16x256xf32>
    %13 = vector.extract_strided_slice %12 {offsets = [0, 0], sizes = [16, 128], strides = [1, 1]} : vector<16x256xf32> to vector<16x128xf32>
    %c0_11 = arith.constant 0 : index
    %c0_12 = arith.constant 0 : index
    %14 = vector.load %arg6[%c0_11, %c0_12] : memref<16x128xf32, #tpu.memory_space<vmem>>, vector<16x128xf32>
    tpu.vector_store %arg6[%c0_11, %c0_12], %13 {strides = array<i32>} : memref<16x128xf32, #tpu.memory_space<vmem>>, vector<16x128xf32>,
    %15 = vector.extract_strided_slice %12 {offsets = [0, 128], sizes = [16, 128], strides = [1, 1]} : vector<16x256xf32> to vector<16x128xf32>
    %16 = arith.negf %15 : vector<16x128xf32>
    %17 = math.exp %16 : vector<16x128xf32>
    %cst_13 = arith.constant 1.000000e+00 : f32
    %18 = vector.broadcast %cst_13 : f32 to vector<16x128xf32>
    %19 = arith.addf %18, %17 : vector<16x128xf32>
    %20 = arith.divf %18, %19 : vector<16x128xf32>
    %c0_14 = arith.constant 0 : index
    %c0_15 = arith.constant 0 : index
    %21 = vector.load %arg7[%c0_14, %c0_15] : memref<16x128xf32, #tpu.memory_space<vmem>>, vector<16x128xf32>
    tpu.vector_store %arg7[%c0_14, %c0_15], %20 {strides = array<i32>} : memref<16x128xf32, #tpu.memory_space<vmem>>, vector<16x128xf32>,
    return
  }
  func.func @transform_0(%arg0: i32) -> (i32, i32) {
    %c0_i32 = arith.constant 0 : i32
    %c0_i32_0 = arith.constant 0 : i32
    return %arg0, %c0_i32 : i32, i32
  }
  func.func @transform_1(%arg0: i32) -> (i32, i32) {
    %c0_i32 = arith.constant 0 : i32
    %c0_i32_0 = arith.constant 0 : i32
    %c0_i32_1 = arith.constant 0 : i32
    return %c0_i32, %c0_i32_0 : i32, i32
  }
  func.func @transform_2(%arg0: i32) -> (i32, i32) {
    %c0_i32 = arith.constant 0 : i32
    %c0_i32_0 = arith.constant 0 : i32
    %c0_i32_1 = arith.constant 0 : i32
    return %c0_i32, %c0_i32_0 : i32, i32
  }
  func.func @transform_3(%arg0: i32) -> (i32, i32) {
    %c0_i32 = arith.constant 0 : i32
    %c0_i32_0 = arith.constant 0 : i32
    %c0_i32_1 = arith.constant 0 : i32
    return %c0_i32, %c0_i32_0 : i32, i32
  }
  func.func @transform_4(%arg0: i32) -> (i32, i32) {
    %c0_i32 = arith.constant 0 : i32
    %c0_i32_0 = arith.constant 0 : i32
    %c0_i32_1 = arith.constant 0 : i32
    return %c0_i32, %c0_i32_0 : i32, i32
  }
  func.func @transform_5(%arg0: i32) -> (i32, i32) {
    %c0_i32 = arith.constant 0 : i32
    %c0_i32_0 = arith.constant 0 : i32
    return %arg0, %c0_i32 : i32, i32
  }
  func.func @transform_6(%arg0: i32) -> (i32, i32) {
    %c0_i32 = arith.constant 0 : i32
    %c0_i32_0 = arith.constant 0 : i32
    return %arg0, %c0_i32 : i32, i32
  }
}

</mosaic_0001>

<bundles_post_ra>
// kernel: tpu_custom_call.1
= control target key start
LH: loop header
LB: loop body
LE: loop exit
PB: predicated region body
PF: predicated region fallthrough
CT: control target
= control target key end

     0   :  { %12 = vsyncpa [#allocation3], 0  ;;  %s640_s0 = inlined_call_operand.hbm [shape: f32[16,32], index: 0, kind: input, shape index: {}]   ;;  %s641_s1 = inlined_call_operand.hbm [shape: f32[32,64], index: 1, kind: input, shape index: {}]   ;;  %s642_s2 = inlined_call_operand.vmem [shape: f32[1,64], index: 2, kind: input, shape index: {}]   ;;  %s643_s3 = inlined_call_operand.hbm [shape: f32[64,256], index: 3, kind: input, shape index: {}]   ;;  %s644_s4 = inlined_call_operand.vmem [shape: f32[1,256], index: 4, kind: input, shape index: {}]   ;;  %s645_s5 = inlined_call_operand.hbm [shape: f32[16,128], index: 5, kind: output, shape index: {0}]   ;;  %s646_s6 = inlined_call_operand.hbm [shape: f32[16,128], index: 6, kind: output, shape index: {1}]  }
   0x1   :  { %13 = vsyncpa [#allocation6], 0 }
   0x2   :  { %14 = vsyncpa [#allocation4], 0 }
   0x3   :  { %15 = vsyncpa [#allocation10], 0  ;;  %s508_s21 = smov [#allocation5]   ;;  %s509_s23 = smov [#allocation2]  }
   0x4   :  { %s33_s22 = sshll.u32 %s508_s21, 4  ;;  %s21_s24 = sshll.u32 %s509_s23, 4  ;;  %s34_s22 = int_to_ptr.vmem [resolvable:$true] %s33_s22  ;;  %s553_s24 = int_to_ptr.vmem [resolvable:$true] %s21_s24 }
   0x5   :  { %s390_s27 = scalar_lea.hbm %s641_s1, 512 }
   0x6   :  { %p391_p0 = scmp.ne.s32.totalorder %s641_s1, %s390_s27  ;;  %p394_p1 = scmp.lt.u32.totalorder %s390_s27, %s641_s1 }
   0x8   :  { %p396_p2 = pnand %p394_p1, %p391_p0 }
   0xa   :  { %399 = shalt.err (!%p396_p2)
}
   0xb   :  { %s400_s8 = scalar_lea.vmem %s34_s22, 512  ;;  %p405_p4 = scmp.lt.s32.totalorder %s34_s22, %s34_s22 }
   0xc   :  { %p401_p3 = scmp.ne.s32.totalorder %s34_s22, %s400_s8  ;;  %p406_p5 = scmp.lt.s32.totalorder %s400_s8, %s400_s8 }
   0xe   :  { %p407_p6 = por %p406_p5, %p405_p4 }
  0x10   :  { %p408_p7 = pnand %p407_p6, %p401_p3 }
  0x12   :  { %411 = shalt.err (!%p408_p7)
}
  0x13   :  { %s510_s9 = smov 128   ;;  %s511_s10 = smov 8  }
  0x14   :  { %39 = dma.hbm_to_vmem [thread:$0]  %s641_s1, 512, %s34_s22, [#allocation6], %s510_s9, %s510_s9, %s511_s10  }
  0x15   :  { %s412_s15 = scalar_lea.hbm %s640_s0, 256 }
  0x16   :  { %p413_p8 = scmp.ne.s32.totalorder %s640_s0, %s412_s15  ;;  %p416_p9 = scmp.lt.u32.totalorder %s412_s15, %s640_s0 }
  0x18   :  { %p418_p10 = pnand %p416_p9, %p413_p8 }
  0x1a   :  { %421 = shalt.err (!%p418_p10)
}
  0x1b   :  { %s422_s20 = scalar_lea.vmem %s553_s24, 256  ;;  %p427_p12 = scmp.lt.s32.totalorder %s553_s24, %s553_s24 }
  0x1c   :  { %p423_p11 = scmp.ne.s32.totalorder %s553_s24, %s422_s20  ;;  %p428_p13 = scmp.lt.s32.totalorder %s422_s20, %s422_s20 }
  0x1e   :  { %p429_p0 = por %p428_p13, %p427_p12 }
  0x20   :  { %p430_p1 = pnand %p429_p0, %p423_p11 }
  0x22   :  { %433 = shalt.err (!%p430_p1)
}
  0x23   :  { %27 = dma.hbm_to_vmem [thread:$0]  %s640_s0, 256, %s553_s24, [#allocation3], %s510_s9, %s510_s9, %s511_s10  }
  0x24   :  { %s512_s22 = smov [#allocation7]   ;;  %s434_s27 = scalar_lea.hbm %s643_s3, 2048 }
  0x25   :  { %s47_s23 = sshll.u32 %s512_s22, 4  ;;  %p435_p2 = scmp.ne.s32.totalorder %s643_s3, %s434_s27  ;;  %s48_s23 = int_to_ptr.vmem [resolvable:$true] %s47_s23 }
  0x26   :  { %p438_p3 = scmp.lt.u32.totalorder %s434_s27, %s643_s3 }
  0x28   :  { %p440_p4 = pnand %p438_p3, %p435_p2 }
  0x2a   :  { %443 = shalt.err (!%p440_p4)
}
  0x2b   :  { %s444_s8 = scalar_lea.vmem %s48_s23, 2048  ;;  %p449_p6 = scmp.lt.s32.totalorder %s48_s23, %s48_s23 }
  0x2c   :  { %p445_p5 = scmp.ne.s32.totalorder %s48_s23, %s444_s8  ;;  %p450_p7 = scmp.lt.s32.totalorder %s444_s8, %s444_s8 }
  0x2e   :  { %p451_p8 = por %p450_p7, %p449_p6 }
  0x30   :  { %p452_p9 = pnand %p451_p8, %p445_p5 }
  0x32   :  { %455 = shalt.err (!%p452_p9)
}
  0x33   :  { %s513_s0 = smov 256   ;;  %s514_s24 = smov 16  }
  0x34   :  { %53 = dma.hbm_to_vmem [thread:$0]  %s643_s3, 2048, %s48_s23, [#allocation6], %s513_s0, %s513_s0, %s514_s24  }
  0x35   :  { %500 = dma.done.wait [#allocation3], 256  }
  0x36   :  { %501 = vsyncadd [#allocation3], 4294967040 }
  0x37   :  { %502 = dma.done.wait [#allocation6], 2560  }
  0x38   :  { %503 = vsyncadd [#allocation6], 4294964736  ;;  %vm78_vm0 = vcmask 261120   ;;  %v67_v0 = vld [vmem:[#allocation5] sm:$0xff]  ;;  %v68_v1 = vld [vmem:[#allocation5 + $0x8] sm:$0xff]  ;;  %v515_v32 = vmov 0.0   ;;  %v180_v40 = vlaneseq }
  0x39   :  { %v69_v2 = vld [vmem:[#allocation5 + $0x10] sm:$0xff]  ;;  %v348_v3 = vpack.c.bf16 %v68_v1, %v67_v0  ;;  %v70_v4 = vld [vmem:[#allocation5 + $0x18] sm:$0xff]  ;;  %v163_v7 = vld [vmem:[#allocation7 + $0x8] sm:$0xff]  ;;  %261 = vmatprep.mubr.f32.mxu1 %v515_v32  ;;  %vm190_vm1 = vcmask 523264  }
  0x3a   :  { %v65_v5 = vld [vmem:[#allocation2] sm:$0xff]  ;;  %v352_v6 = vpack.c.bf16 %v70_v4, %v69_v2  ;;  %v165_v8 = vld [vmem:[#allocation7 + $0x18] sm:$0xff]  ;;  %v162_v9 = vld [vmem:[#allocation7] sm:$0xff]  ;;  %v181_v41 = vshrl.u32 %v180_v40, 7 }
  0x3b   :  { %345 = vmatprep.mubr.msk.f32.mxu0 %vm78_vm0, %v65_v5  ;;  %349 = vmatprep.subr.bf16.mxu0 %v348_v3  ;;  %v356_v10 = vpack.c.bf16 %v165_v8, %v163_v7  ;;  %v164_v11 = vld [vmem:[#allocation7 + $0x10] sm:$0xff]  ;;  %v167_v12 = vld [vmem:[#allocation7 + $0x28] sm:$0xff]  ;;  %v169_v13 = vld [vmem:[#allocation7 + $0x38] sm:$0xff] }
  0x3c   :  { %351 = vmatpush3.bf16.msra.mxu0 %v348_v3  ;;  %v358_v14 = vpack.c.bf16 %v164_v11, %v162_v9  ;;  %v360_v15 = vpack.c.bf16 %v169_v13, %v167_v12  ;;  %v166_v16 = vld [vmem:[#allocation7 + $0x20] sm:$0xff]  ;;  %v168_v17 = vld [vmem:[#allocation7 + $0x30] sm:$0xff]  ;;  %v171_v18 = vld [vmem:[#allocation7 + $0x48] sm:$0xff]  ;;  %v182_v42 = vsub.s32 0, %v181_v41  ;;  %v186_v44 = vsub.s32 1, %v181_v41 }
  0x3d   :  { %353 = vmatprep.subr.bf16.mxu0 %v352_v6  ;;  %357 = vmatprep.subr.bf16.mxu1 %v356_v10  ;;  %v173_v19 = vld [vmem:[#allocation7 + $0x58] sm:$0xff]  ;;  %v362_v20 = vpack.c.bf16 %v168_v17, %v166_v16  ;;  %v170_v22 = vld [vmem:[#allocation7 + $0x40] sm:$0xff]  ;;  %v172_v23 = vld [vmem:[#allocation7 + $0x50] sm:$0xff] }
  0x3e   :  { %359 = vmatpush1.bf16.msra.mxu1 %v358_v14  ;;  %v364_v21 = vpack.c.bf16 %v173_v19, %v171_v18  ;;  %v66_v24 = vld [vmem:[#allocation2 + $0x8] sm:$0xff]  ;;  %v366_v25 = vpack.c.bf16 %v172_v23, %v170_v22  ;;  %v175_v26 = vld [vmem:[#allocation7 + $0x68] sm:$0xff]  ;;  %v174_v29 = vld [vmem:[#allocation7 + $0x60] sm:$0xff] }
  0x3f   :  { %361 = vmatprep.subr.bf16.mxu1 %v360_v15  ;;  %v177_v27 = vld [vmem:[#allocation7 + $0x78] sm:$0xff]  ;;  %v176_v30 = vld [vmem:[#allocation7 + $0x70] sm:$0xff] }
  0x40   :  { %355 = vmatpush3.bf16.msra.mxu0 %v352_v6  ;;  %v368_v28 = vpack.c.bf16 %v177_v27, %v175_v26  ;;  %v370_v31 = vpack.c.bf16 %v176_v30, %v174_v29  ;;  %v324_v33 = vld [vmem:[%s642_s2] ss:$0 sm:$0xff]  ;;  %s516_s2 = smov [#allocation8]  }
  0x41   :  { %v178_v43 = vld [vmem:[%s644_s4] sm:$0x3]  ;;  %s295_s16 = sshll.u32 %s516_s2, 4  ;;  %s296_s16 = int_to_ptr.vmem [resolvable:$true] %s295_s16 }
  0x42   :  { %363 = vmatpush1.bf16.msra.mxu1 %v362_v20  ;;  %v183_v45 = vrot.slane %v178_v43, %v182_v42  ;;  %v187_v46 = vrot.slane %v178_v43, %v186_v44  ;;  %s456_s4 = scalar_lea.vmem %s296_s16, 256  ;;  %p461_p11 = scmp.lt.s32.totalorder %s296_s16, %s296_s16 }
  0x43   :  { %346 = vmatmul.mubr.msk.f32.vlgmr.msra.gmra.mrb[0].mxu0 %vm78_vm0, %v66_v24  ;;  %365 = vmatprep.subr.bf16.mxu1 %v364_v21  ;;  %p457_p10 = scmp.ne.s32.totalorder %s296_s16, %s456_s4  ;;  %p462_p12 = scmp.lt.s32.totalorder %s456_s4, %s456_s4 }
  0x45   :  { %p463_p13 = por %p462_p12, %p461_p11 }
  0x46   :  { %367 = vmatpush1.bf16.msra.mxu1 %v366_v25 }
  0x47   :  { %369 = vmatprep.subr.bf16.mxu1 %v368_v28  ;;  %p464_p0 = pnand %p463_p13, %p457_p10 }
  0x4a   :  { %371 = vmatpush1.bf16.msra.mxu1 %v370_v31 }
 0x116   :  { %v347_v34 = vpop.f32.mrb[0].mxu0 }
 0x117   :  { %v151_v35 = vpop.f32.mrb[1].mxu0  ;;  %v157_v37 = vadd.f32 %v347_v34, %v324_v33 }
 0x118   :  { %v152_v36 = vadd.f32 %v324_v33, %v151_v35 }
 0x119   :  { %v161_v39 = vmax.f32 %v157_v37, 0.0 }
 0x11a   :  { %v160_v38 = vmax.f32 %v152_v36, 0.0 }
 0x11c   :  { %327 = vmatmul.mubr.msk.f32.vlgmr.msra.gmra.mrb[0].mxu1 %vm190_vm1, %v160_v38 }
 0x11d   :  { %267 = vmatprep.mubr.f32.mxu1 %v515_v32 }
 0x120   :  { %328 = vmatmul.mubr.msk.f32.gmra.mrb[2].mxu1 %vm190_vm1, %v161_v39 }
 0x1ef   :  { %v263_v47 = vpop.f32.mrb[0].mxu1 }
 0x1f0   :  { %v264_v48 = vadd.f32 %v263_v47, %v183_v45  ;;  %v265_v49 = vpop.f32.mrb[1].mxu1 }
 0x1f1   :  { %v266_v50 = vadd.f32 %v265_v49, %v187_v46 }
 0x1f2   :  { %274 = vst [vmem:[#allocation8] sm:$0xff] %v264_v48 }
 0x1f3   :  { %v329_v51 = vmul.f32 -1.442695, %v266_v50  ;;  %v269_v52 = vpop.f32.mrb[2].mxu1 }
 0x1f4   :  { %v270_v53 = vadd.f32 %v269_v52, %v183_v45  ;;  %v271_v54 = vpop.f32.mrb[3].mxu1 }
 0x1f5   :  { %382 = vpow2.f32 %v329_v51  ;;  %v272_v55 = vadd.f32 %v271_v54, %v187_v46 }
 0x1f6   :  { %275 = vst [vmem:[#allocation8 + $0x8] sm:$0xff] %v270_v53 }
 0x1f7   :  { %v330_v56 = vmul.f32 -1.442695, %v272_v55 }
 0x1f8   :  { %467 = shalt.err (!%p464_p0)
}
 0x1f9   :  { %s468_s19 = scalar_lea.hbm %s645_s5, 256 }
 0x1fa   :  { %p469_p1 = scmp.ne.s32.totalorder %s645_s5, %s468_s19  ;;  %p472_p2 = scmp.lt.u32.totalorder %s468_s19, %s645_s5 }
 0x1fc   :  { %p474_p3 = pnand %p472_p2, %p469_p1 }
 0x1fe   :  { %477 = shalt.err (!%p474_p3)
}
 0x1ff   :  { %301 = dma.vmem_to_hbm [thread:$0]  %s296_s16, 256, %s645_s5, [#allocation4], %s510_s9, %s510_s9, %s511_s10   ;;  %384 = vpow2.f32 %v330_v56  ;;  %v383_v57 = vpop.eup %382 }
 0x200   :  { %v282_v58 = vadd.f32 1.0, %v383_v57  ;;  %s517_s26 = smov [#allocation9]  }
 0x201   :  { %s307_s27 = sshll.u32 %s517_s26, 4  ;;  %s308_s27 = int_to_ptr.vmem [resolvable:$true] %s307_s27 }
 0x202   :  { %386 = vrcp.f32 %v282_v58  ;;  %s478_s28 = scalar_lea.vmem %s308_s27, 256  ;;  %p483_p5 = scmp.lt.s32.totalorder %s308_s27, %s308_s27 }
 0x203   :  { %p479_p4 = scmp.ne.s32.totalorder %s308_s27, %s478_s28  ;;  %p484_p6 = scmp.lt.s32.totalorder %s478_s28, %s478_s28 }
 0x205   :  { %p485_p7 = por %p484_p6, %p483_p5 }
 0x207   :  { %p486_p8 = pnand %p485_p7, %p479_p4 }
 0x209   :  { %v385_v59 = vpop.eup %384 }
 0x20a   :  { %v283_v60 = vadd.f32 1.0, %v385_v59 }
 0x20c   :  { %388 = vrcp.f32 %v283_v60  ;;  %v387_v61 = vpop.eup %386 }
 0x20d   :  { %288 = vst [vmem:[#allocation9] sm:$0xff] %v387_v61 }
 0x216   :  { %v389_v62 = vpop.eup %388 }
 0x217   :  { %289 = vst [vmem:[#allocation9 + $0x8] sm:$0xff] %v389_v62 }
 0x218   :  { %489 = shalt.err (!%p486_p8)
}
 0x219   :  { %s490_s30 = scalar_lea.hbm %s646_s6, 256 }
 0x21a   :  { %p491_p9 = scmp.ne.s32.totalorder %s646_s6, %s490_s30  ;;  %p494_p10 = scmp.lt.u32.totalorder %s490_s30, %s646_s6 }
 0x21c   :  { %p496_p11 = pnand %p494_p10, %p491_p9 }
 0x21e   :  { %499 = shalt.err (!%p496_p11)
}
 0x21f   :  { %313 = dma.vmem_to_hbm [thread:$0]  %s308_s27, 256, %s646_s6, [#allocation10], %s510_s9, %s510_s9, %s511_s10  }
 0x220   :  { %504 = dma.done.wait [#allocation4], 256  }
 0x221   :  { %505 = vsyncadd [#allocation4], 4294967040 }
 0x222   :  { %506 = dma.done.wait [#allocation10], 256  }
 0x223   :  { %507 = vsyncadd [#allocation10], 4294967040 }
 0x224   :  { %320 = vsyncpa [#allocation3], 1 }
 0x225   :  { %321 = vsyncpa [#allocation6], 1 }
 0x226   :  { %322 = vsyncpa [#allocation4], 1 }
 0x227   :  { %323 = vsyncpa [#allocation10], 1 }

</bundles_post_ra>
